<compile_context>
chip_gen: v7x
topology: tpu7x:2x2x1
jax: 0.10.0
libtpu: 0.0.40
codegen_flags: <defaults>
</compile_context>

<pallas_src>
import jax
import jax.numpy as jnp
from jax import lax
from jax.experimental import pallas as pl
from jax.experimental.pallas import tpu as pltpu


def make_lstm_kernel(seq, H):
    def lstm_kernel(x_ref, wih_ref, whh_ref, b_ref, out_ref):
        # x_ref  : (seq, BT, D)   one batch-tile of independent sequences (seq-major)
        # wih_ref: (D, 4H)        pre-transposed weight_ih_l0 (gate order i,f,g,o)
        # whh_ref: (H, 4H)        pre-transposed weight_hh_l0
        # b_ref  : (1, 4H)        bias_ih_l0 + bias_hh_l0
        # out_ref: (seq, BT, H)
        wih = wih_ref[...]
        whh = whh_ref[...]                       # stays resident in vregs across steps
        bias = b_ref[...]

        # Hoisted input projections + bias: independent of the recurrence, so the
        # scheduler overlaps these MXU ops with the serial h @ W_hh chain.
        xw = [jnp.dot(x_ref[t], wih, preferred_element_type=jnp.float32) + bias
              for t in range(seq)]               # each (BT, 4H)

        BT = x_ref.shape[1]
        h = jnp.zeros((BT, H), jnp.float32)
        c = jnp.zeros((BT, H), jnp.float32)

        # Fully unrolled recurrence (seq is small & static): only the recurrent matmul
        # and the gate math are on the serial critical path.
        for t in range(seq):
            gates = xw[t] + jnp.dot(h, whh, preferred_element_type=jnp.float32)
            sig = jax.nn.sigmoid(gates)          # one EUP pass over the full 4H row
            th = jnp.tanh(gates)                 # one EUP pass over the full 4H row
            # NOTE: these static lane slices cost XLU rotates (gates live at lane
            # offsets 32/64/96); XLU slots are idle here so throughput is unaffected.
            i = sig[:, 0 * H:1 * H]
            f = sig[:, 1 * H:2 * H]
            g = th[:, 2 * H:3 * H]
            o = sig[:, 3 * H:4 * H]

            c = f * c + i * g
            h = o * jnp.tanh(c)
            out_ref[t] = h                       # static-index store, off the h/c chain

    return lstm_kernel


def prepare_lstm_params(w_ih, w_hh, b_ih, b_hh):
    """One-time parameter prep (hoisted out of the per-forward path):
    pre-transpose the PyTorch-layout weights and fold the two biases."""
    w_ih_t = jnp.asarray(w_ih, jnp.float32).T                      # (D, 4H)
    w_hh_t = jnp.asarray(w_hh, jnp.float32).T                      # (H, 4H)
    bias = (jnp.asarray(b_ih, jnp.float32)
            + jnp.asarray(b_hh, jnp.float32)).reshape(1, -1)       # (1, 4H)
    return w_ih_t, w_hh_t, bias


@jax.jit
def lstm_forward(x, w_ih_t, w_hh_t, bias):
    """x: (seq, B, D) — B independent sequences. Returns (seq, B, H) hidden outputs,
    zero initial state (matching the module's zero hidden_cell)."""
    seq, B, D = x.shape
    H = w_hh_t.shape[0]

    # Fill sublanes / MXU rows: pad batch to a multiple of 8 and pick a batch tile.
    # For large batches of independent sequences the grid shards tiles across cores.
    B_pad = max(8, ((B + 7) // 8) * 8)
    if B_pad <= 256:
        BT = B_pad
    else:
        BT = 256
        B_pad = ((B_pad + BT - 1) // BT) * BT

    x_p = jnp.pad(jnp.asarray(x, jnp.float32), ((0, 0), (0, B_pad - B), (0, 0)))

    out = pl.pallas_call(
        make_lstm_kernel(seq, H),
        out_shape=jax.ShapeDtypeStruct((seq, B_pad, H), jnp.float32),
        grid=(B_pad // BT,),
        in_specs=[
            pl.BlockSpec((seq, BT, D), lambda b: (0, b, 0)),
            pl.BlockSpec((D, 4 * H), lambda b: (0, 0)),
            pl.BlockSpec((H, 4 * H), lambda b: (0, 0)),
            pl.BlockSpec((1, 4 * H), lambda b: (0, 0)),
        ],
        out_specs=pl.BlockSpec((seq, BT, H), lambda b: (0, b, 0)),
        compiler_params=pltpu.CompilerParams(
            dimension_semantics=("parallel",)),   # batch tiles shard across v7x's 2 TCs
    )(x_p, w_ih_t, w_hh_t, bias)

    return out[:, :B, :]


def lstm_reference(x, w_ih, w_hh, b_ih, b_hh):
    """Plain-JAX reference matching torch.nn.LSTM (single layer, zero init state)."""
    seq, B, D = x.shape
    H = w_hh.shape[1]
    bias = b_ih + b_hh

    def step(carry, x_t):
        h, c = carry
        gates = x_t @ w_ih.T + h @ w_hh.T + bias
        i = jax.nn.sigmoid(gates[:, 0 * H:1 * H])
        f = jax.nn.sigmoid(gates[:, 1 * H:2 * H])
        g = jnp.tanh(gates[:, 2 * H:3 * H])
        o = jax.nn.sigmoid(gates[:, 3 * H:4 * H])
        c_new = f * c + i * g
        h_new = o * jnp.tanh(c_new)
        return (h_new, c_new), h_new

    h0 = jnp.zeros((B, H), jnp.float32)
    c0 = jnp.zeros((B, H), jnp.float32)
    _, ys = lax.scan(step, (h0, c0), x)
    return ys


if __name__ == "__main__":
    # Module config: input_dim=16, hidden_dim=32, output_dim=1, num_layers=1.
    seq, batch, input_dim, hidden_dim = 8, 1, 16, 32

    key = jax.random.PRNGKey(0)
    kx, kxb, k1, k2, k3, k4 = jax.random.split(key, 6)

    # PyTorch-style uniform(-1/sqrt(H), 1/sqrt(H)) init, deterministic.
    bound = 1.0 / jnp.sqrt(jnp.float32(hidden_dim))
    w_ih = jax.random.uniform(k1, (4 * hidden_dim, input_dim), jnp.float32, -bound, bound)
    w_hh = jax.random.uniform(k2, (4 * hidden_dim, hidden_dim), jnp.float32, -bound, bound)
    b_ih = jax.random.uniform(k3, (4 * hidden_dim,), jnp.float32, -bound, bound)
    b_hh = jax.random.uniform(k4, (4 * hidden_dim,), jnp.float32, -bound, bound)

    # One-time parameter prep (hoisted out of the per-forward path).
    w_ih_t, w_hh_t, bias = prepare_lstm_params(w_ih, w_hh, b_ih, b_hh)

    # 1) Module semantics: batch=1 sequence (output_dim==1 hidden state), zero init.
    x = jax.random.normal(kx, (seq, batch, input_dim), jnp.float32)
    out = jax.block_until_ready(lstm_forward(x, w_ih_t, w_hh_t, bias))
    ref = jax.block_until_ready(lstm_reference(x, w_ih, w_hh, b_ih, b_hh))
    assert out.shape == (seq, batch, hidden_dim)
    assert jnp.allclose(out, ref, atol=1e-5, rtol=1e-5), "Pallas LSTM mismatch (B=1)"

    # 2) Batched independent sequences: fills the sublane / MXU-row dimension so each
    #    VPU/EUP/MXU op carries 8x the data for the same per-step latency.
    xb = jax.random.normal(kxb, (seq, 8, input_dim), jnp.float32)
    outb = jax.block_until_ready(lstm_forward(xb, w_ih_t, w_hh_t, bias))
    refb = jax.block_until_ready(lstm_reference(xb, w_ih, w_hh, b_ih, b_hh))
    assert jnp.allclose(outb, refb, atol=1e-5, rtol=1e-5), "Pallas LSTM mismatch (B=8)"

    print("KERNEL_OK")
</pallas_src>

<mosaic_0001>
module attributes {stable_mosaic.version = 11 : i64} {
  func.func @lstm_kernel(%arg0: i32, %arg1: memref<8x8x16xf32, #tpu.memory_space<vmem>>, %arg2: memref<16x128xf32, #tpu.memory_space<vmem>>, %arg3: memref<32x128xf32, #tpu.memory_space<vmem>>, %arg4: memref<1x128xf32, #tpu.memory_space<vmem>>, %arg5: memref<8x8x32xf32, #tpu.memory_space<vmem>>) attributes {dimension_semantics = [#tpu.dimension_semantics<parallel>], iteration_bounds = array<i64: 1>, scalar_prefetch = 0 : i64, scratch_operands = 0 : i64, tpu.core_type = #tpu.core_type<tc>, window_params = [{transform_indices = @transform_0, window_bounds = array<i64: 8, 8, 16>}, {pipeline_mode = #tpu.pipeline_mode<synchronous>, transform_indices = @transform_1, window_bounds = array<i64: 16, 128>}, {pipeline_mode = #tpu.pipeline_mode<synchronous>, transform_indices = @transform_2, window_bounds = array<i64: 32, 128>}, {pipeline_mode = #tpu.pipeline_mode<synchronous>, transform_indices = @transform_3, window_bounds = array<i64: 1, 128>}, {transform_indices = @transform_4, window_bounds = array<i64: 8, 8, 32>}]} {
    %c0 = arith.constant 0 : index
    %c0_0 = arith.constant 0 : index
    %0 = vector.load %arg2[%c0, %c0_0] : memref<16x128xf32, #tpu.memory_space<vmem>>, vector<16x128xf32>
    %c0_1 = arith.constant 0 : index
    %c0_2 = arith.constant 0 : index
    %1 = vector.load %arg3[%c0_1, %c0_2] : memref<32x128xf32, #tpu.memory_space<vmem>>, vector<32x128xf32>
    %c0_3 = arith.constant 0 : index
    %c0_4 = arith.constant 0 : index
    %2 = vector.load %arg4[%c0_3, %c0_4] : memref<1x128xf32, #tpu.memory_space<vmem>>, vector<1x128xf32>
    %c0_5 = arith.constant 0 : index
    %c0_6 = arith.constant 0 : index
    %c0_7 = arith.constant 0 : index
    %3 = vector.load %arg1[%c0_5, %c0_6, %c0_7] : memref<8x8x16xf32, #tpu.memory_space<vmem>>, vector<1x8x16xf32>
    %4 = vector.shape_cast %3 : vector<1x8x16xf32> to vector<8x16xf32>
    %cst = arith.constant dense<0.000000e+00> : vector<8x128xf32>
    %5 = tpu.matmul %4, %0, %cst {dimension_numbers = #tpu.dot_dimension_numbers<[1], [0], [0], [1], [0, 0, 1, 1], [], []>} : vector<8x16xf32>, vector<16x128xf32>, vector<8x128xf32> -> vector<8x128xf32>
    %6 = vector.broadcast %2 : vector<1x128xf32> to vector<8x128xf32>
    %7 = arith.addf %5, %6 : vector<8x128xf32>
    %c1 = arith.constant 1 : index
    %c0_8 = arith.constant 0 : index
    %c0_9 = arith.constant 0 : index
    %8 = vector.load %arg1[%c1, %c0_8, %c0_9] : memref<8x8x16xf32, #tpu.memory_space<vmem>>, vector<1x8x16xf32>
    %9 = vector.shape_cast %8 : vector<1x8x16xf32> to vector<8x16xf32>
    %cst_10 = arith.constant dense<0.000000e+00> : vector<8x128xf32>
    %10 = tpu.matmul %9, %0, %cst_10 {dimension_numbers = #tpu.dot_dimension_numbers<[1], [0], [0], [1], [0, 0, 1, 1], [], []>} : vector<8x16xf32>, vector<16x128xf32>, vector<8x128xf32> -> vector<8x128xf32>
    %11 = vector.broadcast %2 : vector<1x128xf32> to vector<8x128xf32>
    %12 = arith.addf %10, %11 : vector<8x128xf32>
    %c2 = arith.constant 2 : index
    %c0_11 = arith.constant 0 : index
    %c0_12 = arith.constant 0 : index
    %13 = vector.load %arg1[%c2, %c0_11, %c0_12] : memref<8x8x16xf32, #tpu.memory_space<vmem>>, vector<1x8x16xf32>
    %14 = vector.shape_cast %13 : vector<1x8x16xf32> to vector<8x16xf32>
    %cst_13 = arith.constant dense<0.000000e+00> : vector<8x128xf32>
    %15 = tpu.matmul %14, %0, %cst_13 {dimension_numbers = #tpu.dot_dimension_numbers<[1], [0], [0], [1], [0, 0, 1, 1], [], []>} : vector<8x16xf32>, vector<16x128xf32>, vector<8x128xf32> -> vector<8x128xf32>
    %16 = vector.broadcast %2 : vector<1x128xf32> to vector<8x128xf32>
    %17 = arith.addf %15, %16 : vector<8x128xf32>
    %c3 = arith.constant 3 : index
    %c0_14 = arith.constant 0 : index
    %c0_15 = arith.constant 0 : index
    %18 = vector.load %arg1[%c3, %c0_14, %c0_15] : memref<8x8x16xf32, #tpu.memory_space<vmem>>, vector<1x8x16xf32>
    %19 = vector.shape_cast %18 : vector<1x8x16xf32> to vector<8x16xf32>
    %cst_16 = arith.constant dense<0.000000e+00> : vector<8x128xf32>
    %20 = tpu.matmul %19, %0, %cst_16 {dimension_numbers = #tpu.dot_dimension_numbers<[1], [0], [0], [1], [0, 0, 1, 1], [], []>} : vector<8x16xf32>, vector<16x128xf32>, vector<8x128xf32> -> vector<8x128xf32>
    %21 = vector.broadcast %2 : vector<1x128xf32> to vector<8x128xf32>
    %22 = arith.addf %20, %21 : vector<8x128xf32>
    %c4 = arith.constant 4 : index
    %c0_17 = arith.constant 0 : index
    %c0_18 = arith.constant 0 : index
    %23 = vector.load %arg1[%c4, %c0_17, %c0_18] : memref<8x8x16xf32, #tpu.memory_space<vmem>>, vector<1x8x16xf32>
    %24 = vector.shape_cast %23 : vector<1x8x16xf32> to vector<8x16xf32>
    %cst_19 = arith.constant dense<0.000000e+00> : vector<8x128xf32>
    %25 = tpu.matmul %24, %0, %cst_19 {dimension_numbers = #tpu.dot_dimension_numbers<[1], [0], [0], [1], [0, 0, 1, 1], [], []>} : vector<8x16xf32>, vector<16x128xf32>, vector<8x128xf32> -> vector<8x128xf32>
    %26 = vector.broadcast %2 : vector<1x128xf32> to vector<8x128xf32>
    %27 = arith.addf %25, %26 : vector<8x128xf32>
    %c5 = arith.constant 5 : index
    %c0_20 = arith.constant 0 : index
    %c0_21 = arith.constant 0 : index
    %28 = vector.load %arg1[%c5, %c0_20, %c0_21] : memref<8x8x16xf32, #tpu.memory_space<vmem>>, vector<1x8x16xf32>
    %29 = vector.shape_cast %28 : vector<1x8x16xf32> to vector<8x16xf32>
    %cst_22 = arith.constant dense<0.000000e+00> : vector<8x128xf32>
    %30 = tpu.matmul %29, %0, %cst_22 {dimension_numbers = #tpu.dot_dimension_numbers<[1], [0], [0], [1], [0, 0, 1, 1], [], []>} : vector<8x16xf32>, vector<16x128xf32>, vector<8x128xf32> -> vector<8x128xf32>
    %31 = vector.broadcast %2 : vector<1x128xf32> to vector<8x128xf32>
    %32 = arith.addf %30, %31 : vector<8x128xf32>
    %c6 = arith.constant 6 : index
    %c0_23 = arith.constant 0 : index
    %c0_24 = arith.constant 0 : index
    %33 = vector.load %arg1[%c6, %c0_23, %c0_24] : memref<8x8x16xf32, #tpu.memory_space<vmem>>, vector<1x8x16xf32>
    %34 = vector.shape_cast %33 : vector<1x8x16xf32> to vector<8x16xf32>
    %cst_25 = arith.constant dense<0.000000e+00> : vector<8x128xf32>
    %35 = tpu.matmul %34, %0, %cst_25 {dimension_numbers = #tpu.dot_dimension_numbers<[1], [0], [0], [1], [0, 0, 1, 1], [], []>} : vector<8x16xf32>, vector<16x128xf32>, vector<8x128xf32> -> vector<8x128xf32>
    %36 = vector.broadcast %2 : vector<1x128xf32> to vector<8x128xf32>
    %37 = arith.addf %35, %36 : vector<8x128xf32>
    %c7 = arith.constant 7 : index
    %c0_26 = arith.constant 0 : index
    %c0_27 = arith.constant 0 : index
    %38 = vector.load %arg1[%c7, %c0_26, %c0_27] : memref<8x8x16xf32, #tpu.memory_space<vmem>>, vector<1x8x16xf32>
    %39 = vector.shape_cast %38 : vector<1x8x16xf32> to vector<8x16xf32>
    %cst_28 = arith.constant dense<0.000000e+00> : vector<8x128xf32>
    %40 = tpu.matmul %39, %0, %cst_28 {dimension_numbers = #tpu.dot_dimension_numbers<[1], [0], [0], [1], [0, 0, 1, 1], [], []>} : vector<8x16xf32>, vector<16x128xf32>, vector<8x128xf32> -> vector<8x128xf32>
    %41 = vector.broadcast %2 : vector<1x128xf32> to vector<8x128xf32>
    %42 = arith.addf %40, %41 : vector<8x128xf32>
    %cst_29 = arith.constant 0.000000e+00 : f32
    %43 = vector.broadcast %cst_29 : f32 to vector<8x32xf32>
    %cst_30 = arith.constant 0.000000e+00 : f32
    %44 = vector.broadcast %cst_30 : f32 to vector<8x32xf32>
    %cst_31 = arith.constant dense<0.000000e+00> : vector<8x128xf32>
    %45 = tpu.matmul %43, %1, %cst_31 {dimension_numbers = #tpu.dot_dimension_numbers<[1], [0], [0], [1], [0, 0, 1, 1], [], []>} : vector<8x32xf32>, vector<32x128xf32>, vector<8x128xf32> -> vector<8x128xf32>
    %46 = arith.addf %7, %45 : vector<8x128xf32>
    %47 = arith.negf %46 : vector<8x128xf32>
    %48 = math.exp %47 : vector<8x128xf32>
    %cst_32 = arith.constant 1.000000e+00 : f32
    %49 = vector.broadcast %cst_32 : f32 to vector<8x128xf32>
    %50 = arith.addf %49, %48 : vector<8x128xf32>
    %51 = arith.divf %49, %50 : vector<8x128xf32>
    %52 = math.tanh %46 : vector<8x128xf32>
    %53 = vector.extract_strided_slice %51 {offsets = [0, 0], sizes = [8, 32], strides = [1, 1]} : vector<8x128xf32> to vector<8x32xf32>
    %54 = vector.extract_strided_slice %51 {offsets = [0, 32], sizes = [8, 32], strides = [1, 1]} : vector<8x128xf32> to vector<8x32xf32>
    %55 = vector.extract_strided_slice %52 {offsets = [0, 64], sizes = [8, 32], strides = [1, 1]} : vector<8x128xf32> to vector<8x32xf32>
    %56 = vector.extract_strided_slice %51 {offsets = [0, 96], sizes = [8, 32], strides = [1, 1]} : vector<8x128xf32> to vector<8x32xf32>
    %57 = arith.mulf %54, %44 : vector<8x32xf32>
    %58 = arith.mulf %53, %55 : vector<8x32xf32>
    %59 = arith.addf %57, %58 : vector<8x32xf32>
    %60 = math.tanh %59 : vector<8x32xf32>
    %61 = arith.mulf %56, %60 : vector<8x32xf32>
    %c0_33 = arith.constant 0 : index
    %c0_34 = arith.constant 0 : index
    %c0_35 = arith.constant 0 : index
    %62 = vector.load %arg5[%c0_33, %c0_34, %c0_35] : memref<8x8x32xf32, #tpu.memory_space<vmem>>, vector<1x8x32xf32>
    %63 = vector.shape_cast %62 : vector<1x8x32xf32> to vector<8x32xf32>
    %64 = vector.shape_cast %61 : vector<8x32xf32> to vector<1x8x32xf32>
    tpu.vector_store %arg5[%c0_33, %c0_34, %c0_35], %64 {strides = array<i32>} : memref<8x8x32xf32, #tpu.memory_space<vmem>>, vector<1x8x32xf32>,
    %cst_36 = arith.constant dense<0.000000e+00> : vector<8x128xf32>
    %65 = tpu.matmul %61, %1, %cst_36 {dimension_numbers = #tpu.dot_dimension_numbers<[1], [0], [0], [1], [0, 0, 1, 1], [], []>} : vector<8x32xf32>, vector<32x128xf32>, vector<8x128xf32> -> vector<8x128xf32>
    %66 = arith.addf %12, %65 : vector<8x128xf32>
    %67 = arith.negf %66 : vector<8x128xf32>
    %68 = math.exp %67 : vector<8x128xf32>
    %cst_37 = arith.constant 1.000000e+00 : f32
    %69 = vector.broadcast %cst_37 : f32 to vector<8x128xf32>
    %70 = arith.addf %69, %68 : vector<8x128xf32>
    %71 = arith.divf %69, %70 : vector<8x128xf32>
    %72 = math.tanh %66 : vector<8x128xf32>
    %73 = vector.extract_strided_slice %71 {offsets = [0, 0], sizes = [8, 32], strides = [1, 1]} : vector<8x128xf32> to vector<8x32xf32>
    %74 = vector.extract_strided_slice %71 {offsets = [0, 32], sizes = [8, 32], strides = [1, 1]} : vector<8x128xf32> to vector<8x32xf32>
    %75 = vector.extract_strided_slice %72 {offsets = [0, 64], sizes = [8, 32], strides = [1, 1]} : vector<8x128xf32> to vector<8x32xf32>
    %76 = vector.extract_strided_slice %71 {offsets = [0, 96], sizes = [8, 32], strides = [1, 1]} : vector<8x128xf32> to vector<8x32xf32>
    %77 = arith.mulf %74, %59 : vector<8x32xf32>
    %78 = arith.mulf %73, %75 : vector<8x32xf32>
    %79 = arith.addf %77, %78 : vector<8x32xf32>
    %80 = math.tanh %79 : vector<8x32xf32>
    %81 = arith.mulf %76, %80 : vector<8x32xf32>
    %c1_38 = arith.constant 1 : index
    %c0_39 = arith.constant 0 : index
    %c0_40 = arith.constant 0 : index
    %82 = vector.load %arg5[%c1_38, %c0_39, %c0_40] : memref<8x8x32xf32, #tpu.memory_space<vmem>>, vector<1x8x32xf32>
    %83 = vector.shape_cast %82 : vector<1x8x32xf32> to vector<8x32xf32>
    %84 = vector.shape_cast %81 : vector<8x32xf32> to vector<1x8x32xf32>
    tpu.vector_store %arg5[%c1_38, %c0_39, %c0_40], %84 {strides = array<i32>} : memref<8x8x32xf32, #tpu.memory_space<vmem>>, vector<1x8x32xf32>,
    %cst_41 = arith.constant dense<0.000000e+00> : vector<8x128xf32>
    %85 = tpu.matmul %81, %1, %cst_41 {dimension_numbers = #tpu.dot_dimension_numbers<[1], [0], [0], [1], [0, 0, 1, 1], [], []>} : vector<8x32xf32>, vector<32x128xf32>, vector<8x128xf32> -> vector<8x128xf32>
    %86 = arith.addf %17, %85 : vector<8x128xf32>
    %87 = arith.negf %86 : vector<8x128xf32>
    %88 = math.exp %87 : vector<8x128xf32>
    %cst_42 = arith.constant 1.000000e+00 : f32
    %89 = vector.broadcast %cst_42 : f32 to vector<8x128xf32>
    %90 = arith.addf %89, %88 : vector<8x128xf32>
    %91 = arith.divf %89, %90 : vector<8x128xf32>
    %92 = math.tanh %86 : vector<8x128xf32>
    %93 = vector.extract_strided_slice %91 {offsets = [0, 0], sizes = [8, 32], strides = [1, 1]} : vector<8x128xf32> to vector<8x32xf32>
    %94 = vector.extract_strided_slice %91 {offsets = [0, 32], sizes = [8, 32], strides = [1, 1]} : vector<8x128xf32> to vector<8x32xf32>
    %95 = vector.extract_strided_slice %92 {offsets = [0, 64], sizes = [8, 32], strides = [1, 1]} : vector<8x128xf32> to vector<8x32xf32>
    %96 = vector.extract_strided_slice %91 {offsets = [0, 96], sizes = [8, 32], strides = [1, 1]} : vector<8x128xf32> to vector<8x32xf32>
    %97 = arith.mulf %94, %79 : vector<8x32xf32>
    %98 = arith.mulf %93, %95 : vector<8x32xf32>
    %99 = arith.addf %97, %98 : vector<8x32xf32>
    %100 = math.tanh %99 : vector<8x32xf32>
    %101 = arith.mulf %96, %100 : vector<8x32xf32>
    %c2_43 = arith.constant 2 : index
    %c0_44 = arith.constant 0 : index
    %c0_45 = arith.constant 0 : index
    %102 = vector.load %arg5[%c2_43, %c0_44, %c0_45] : memref<8x8x32xf32, #tpu.memory_space<vmem>>, vector<1x8x32xf32>
    %103 = vector.shape_cast %102 : vector<1x8x32xf32> to vector<8x32xf32>
    %104 = vector.shape_cast %101 : vector<8x32xf32> to vector<1x8x32xf32>
    tpu.vector_store %arg5[%c2_43, %c0_44, %c0_45], %104 {strides = array<i32>} : memref<8x8x32xf32, #tpu.memory_space<vmem>>, vector<1x8x32xf32>,
    %cst_46 = arith.constant dense<0.000000e+00> : vector<8x128xf32>
    %105 = tpu.matmul %101, %1, %cst_46 {dimension_numbers = #tpu.dot_dimension_numbers<[1], [0], [0], [1], [0, 0, 1, 1], [], []>} : vector<8x32xf32>, vector<32x128xf32>, vector<8x128xf32> -> vector<8x128xf32>
    %106 = arith.addf %22, %105 : vector<8x128xf32>
    %107 = arith.negf %106 : vector<8x128xf32>
    %108 = math.exp %107 : vector<8x128xf32>
    %cst_47 = arith.constant 1.000000e+00 : f32
    %109 = vector.broadcast %cst_47 : f32 to vector<8x128xf32>
    %110 = arith.addf %109, %108 : vector<8x128xf32>
    %111 = arith.divf %109, %110 : vector<8x128xf32>
    %112 = math.tanh %106 : vector<8x128xf32>
    %113 = vector.extract_strided_slice %111 {offsets = [0, 0], sizes = [8, 32], strides = [1, 1]} : vector<8x128xf32> to vector<8x32xf32>
    %114 = vector.extract_strided_slice %111 {offsets = [0, 32], sizes = [8, 32], strides = [1, 1]} : vector<8x128xf32> to vector<8x32xf32>
    %115 = vector.extract_strided_slice %112 {offsets = [0, 64], sizes = [8, 32], strides = [1, 1]} : vector<8x128xf32> to vector<8x32xf32>
    %116 = vector.extract_strided_slice %111 {offsets = [0, 96], sizes = [8, 32], strides = [1, 1]} : vector<8x128xf32> to vector<8x32xf32>
    %117 = arith.mulf %114, %99 : vector<8x32xf32>
    %118 = arith.mulf %113, %115 : vector<8x32xf32>
    %119 = arith.addf %117, %118 : vector<8x32xf32>
    %120 = math.tanh %119 : vector<8x32xf32>
    %121 = arith.mulf %116, %120 : vector<8x32xf32>
    %c3_48 = arith.constant 3 : index
    %c0_49 = arith.constant 0 : index
    %c0_50 = arith.constant 0 : index
    %122 = vector.load %arg5[%c3_48, %c0_49, %c0_50] : memref<8x8x32xf32, #tpu.memory_space<vmem>>, vector<1x8x32xf32>
    %123 = vector.shape_cast %122 : vector<1x8x32xf32> to vector<8x32xf32>
    %124 = vector.shape_cast %121 : vector<8x32xf32> to vector<1x8x32xf32>
    tpu.vector_store %arg5[%c3_48, %c0_49, %c0_50], %124 {strides = array<i32>} : memref<8x8x32xf32, #tpu.memory_space<vmem>>, vector<1x8x32xf32>,
    %cst_51 = arith.constant dense<0.000000e+00> : vector<8x128xf32>
    %125 = tpu.matmul %121, %1, %cst_51 {dimension_numbers = #tpu.dot_dimension_numbers<[1], [0], [0], [1], [0, 0, 1, 1], [], []>} : vector<8x32xf32>, vector<32x128xf32>, vector<8x128xf32> -> vector<8x128xf32>
    %126 = arith.addf %27, %125 : vector<8x128xf32>
    %127 = arith.negf %126 : vector<8x128xf32>
    %128 = math.exp %127 : vector<8x128xf32>
    %cst_52 = arith.constant 1.000000e+00 : f32
    %129 = vector.broadcast %cst_52 : f32 to vector<8x128xf32>
    %130 = arith.addf %129, %128 : vector<8x128xf32>
    %131 = arith.divf %129, %130 : vector<8x128xf32>
    %132 = math.tanh %126 : vector<8x128xf32>
    %133 = vector.extract_strided_slice %131 {offsets = [0, 0], sizes = [8, 32], strides = [1, 1]} : vector<8x128xf32> to vector<8x32xf32>
    %134 = vector.extract_strided_slice %131 {offsets = [0, 32], sizes = [8, 32], strides = [1, 1]} : vector<8x128xf32> to vector<8x32xf32>
    %135 = vector.extract_strided_slice %132 {offsets = [0, 64], sizes = [8, 32], strides = [1, 1]} : vector<8x128xf32> to vector<8x32xf32>
    %136 = vector.extract_strided_slice %131 {offsets = [0, 96], sizes = [8, 32], strides = [1, 1]} : vector<8x128xf32> to vector<8x32xf32>
    %137 = arith.mulf %134, %119 : vector<8x32xf32>
    %138 = arith.mulf %133, %135 : vector<8x32xf32>
    %139 = arith.addf %137, %138 : vector<8x32xf32>
    %140 = math.tanh %139 : vector<8x32xf32>
    %141 = arith.mulf %136, %140 : vector<8x32xf32>
    %c4_53 = arith.constant 4 : index
    %c0_54 = arith.constant 0 : index
    %c0_55 = arith.constant 0 : index
    %142 = vector.load %arg5[%c4_53, %c0_54, %c0_55] : memref<8x8x32xf32, #tpu.memory_space<vmem>>, vector<1x8x32xf32>
    %143 = vector.shape_cast %142 : vector<1x8x32xf32> to vector<8x32xf32>
    %144 = vector.shape_cast %141 : vector<8x32xf32> to vector<1x8x32xf32>
    tpu.vector_store %arg5[%c4_53, %c0_54, %c0_55], %144 {strides = array<i32>} : memref<8x8x32xf32, #tpu.memory_space<vmem>>, vector<1x8x32xf32>,
    %cst_56 = arith.constant dense<0.000000e+00> : vector<8x128xf32>
    %145 = tpu.matmul %141, %1, %cst_56 {dimension_numbers = #tpu.dot_dimension_numbers<[1], [0], [0], [1], [0, 0, 1, 1], [], []>} : vector<8x32xf32>, vector<32x128xf32>, vector<8x128xf32> -> vector<8x128xf32>
    %146 = arith.addf %32, %145 : vector<8x128xf32>
    %147 = arith.negf %146 : vector<8x128xf32>
    %148 = math.exp %147 : vector<8x128xf32>
    %cst_57 = arith.constant 1.000000e+00 : f32
    %149 = vector.broadcast %cst_57 : f32 to vector<8x128xf32>
    %150 = arith.addf %149, %148 : vector<8x128xf32>
    %151 = arith.divf %149, %150 : vector<8x128xf32>
    %152 = math.tanh %146 : vector<8x128xf32>
    %153 = vector.extract_strided_slice %151 {offsets = [0, 0], sizes = [8, 32], strides = [1, 1]} : vector<8x128xf32> to vector<8x32xf32>
    %154 = vector.extract_strided_slice %151 {offsets = [0, 32], sizes = [8, 32], strides = [1, 1]} : vector<8x128xf32> to vector<8x32xf32>
    %155 = vector.extract_strided_slice %152 {offsets = [0, 64], sizes = [8, 32], strides = [1, 1]} : vector<8x128xf32> to vector<8x32xf32>
    %156 = vector.extract_strided_slice %151 {offsets = [0, 96], sizes = [8, 32], strides = [1, 1]} : vector<8x128xf32> to vector<8x32xf32>
    %157 = arith.mulf %154, %139 : vector<8x32xf32>
    %158 = arith.mulf %153, %155 : vector<8x32xf32>
    %159 = arith.addf %157, %158 : vector<8x32xf32>
    %160 = math.tanh %159 : vector<8x32xf32>
    %161 = arith.mulf %156, %160 : vector<8x32xf32>
    %c5_58 = arith.constant 5 : index
    %c0_59 = arith.constant 0 : index
    %c0_60 = arith.constant 0 : index
    %162 = vector.load %arg5[%c5_58, %c0_59, %c0_60] : memref<8x8x32xf32, #tpu.memory_space<vmem>>, vector<1x8x32xf32>
    %163 = vector.shape_cast %162 : vector<1x8x32xf32> to vector<8x32xf32>
    %164 = vector.shape_cast %161 : vector<8x32xf32> to vector<1x8x32xf32>
    tpu.vector_store %arg5[%c5_58, %c0_59, %c0_60], %164 {strides = array<i32>} : memref<8x8x32xf32, #tpu.memory_space<vmem>>, vector<1x8x32xf32>,
    %cst_61 = arith.constant dense<0.000000e+00> : vector<8x128xf32>
    %165 = tpu.matmul %161, %1, %cst_61 {dimension_numbers = #tpu.dot_dimension_numbers<[1], [0], [0], [1], [0, 0, 1, 1], [], []>} : vector<8x32xf32>, vector<32x128xf32>, vector<8x128xf32> -> vector<8x128xf32>
    %166 = arith.addf %37, %165 : vector<8x128xf32>
    %167 = arith.negf %166 : vector<8x128xf32>
    %168 = math.exp %167 : vector<8x128xf32>
    %cst_62 = arith.constant 1.000000e+00 : f32
    %169 = vector.broadcast %cst_62 : f32 to vector<8x128xf32>
    %170 = arith.addf %169, %168 : vector<8x128xf32>
    %171 = arith.divf %169, %170 : vector<8x128xf32>
    %172 = math.tanh %166 : vector<8x128xf32>
    %173 = vector.extract_strided_slice %171 {offsets = [0, 0], sizes = [8, 32], strides = [1, 1]} : vector<8x128xf32> to vector<8x32xf32>
    %174 = vector.extract_strided_slice %171 {offsets = [0, 32], sizes = [8, 32], strides = [1, 1]} : vector<8x128xf32> to vector<8x32xf32>
    %175 = vector.extract_strided_slice %172 {offsets = [0, 64], sizes = [8, 32], strides = [1, 1]} : vector<8x128xf32> to vector<8x32xf32>
    %176 = vector.extract_strided_slice %171 {offsets = [0, 96], sizes = [8, 32], strides = [1, 1]} : vector<8x128xf32> to vector<8x32xf32>
    %177 = arith.mulf %174, %159 : vector<8x32xf32>
    %178 = arith.mulf %173, %175 : vector<8x32xf32>
    %179 = arith.addf %177, %178 : vector<8x32xf32>
    %180 = math.tanh %179 : vector<8x32xf32>
    %181 = arith.mulf %176, %180 : vector<8x32xf32>
    %c6_63 = arith.constant 6 : index
    %c0_64 = arith.constant 0 : index
    %c0_65 = arith.constant 0 : index
    %182 = vector.load %arg5[%c6_63, %c0_64, %c0_65] : memref<8x8x32xf32, #tpu.memory_space<vmem>>, vector<1x8x32xf32>
    %183 = vector.shape_cast %182 : vector<1x8x32xf32> to vector<8x32xf32>
    %184 = vector.shape_cast %181 : vector<8x32xf32> to vector<1x8x32xf32>
    tpu.vector_store %arg5[%c6_63, %c0_64, %c0_65], %184 {strides = array<i32>} : memref<8x8x32xf32, #tpu.memory_space<vmem>>, vector<1x8x32xf32>,
    %cst_66 = arith.constant dense<0.000000e+00> : vector<8x128xf32>
    %185 = tpu.matmul %181, %1, %cst_66 {dimension_numbers = #tpu.dot_dimension_numbers<[1], [0], [0], [1], [0, 0, 1, 1], [], []>} : vector<8x32xf32>, vector<32x128xf32>, vector<8x128xf32> -> vector<8x128xf32>
    %186 = arith.addf %42, %185 : vector<8x128xf32>
    %187 = arith.negf %186 : vector<8x128xf32>
    %188 = math.exp %187 : vector<8x128xf32>
    %cst_67 = arith.constant 1.000000e+00 : f32
    %189 = vector.broadcast %cst_67 : f32 to vector<8x128xf32>
    %190 = arith.addf %189, %188 : vector<8x128xf32>
    %191 = arith.divf %189, %190 : vector<8x128xf32>
    %192 = math.tanh %186 : vector<8x128xf32>
    %193 = vector.extract_strided_slice %191 {offsets = [0, 0], sizes = [8, 32], strides = [1, 1]} : vector<8x128xf32> to vector<8x32xf32>
    %194 = vector.extract_strided_slice %191 {offsets = [0, 32], sizes = [8, 32], strides = [1, 1]} : vector<8x128xf32> to vector<8x32xf32>
    %195 = vector.extract_strided_slice %192 {offsets = [0, 64], sizes = [8, 32], strides = [1, 1]} : vector<8x128xf32> to vector<8x32xf32>
    %196 = vector.extract_strided_slice %191 {offsets = [0, 96], sizes = [8, 32], strides = [1, 1]} : vector<8x128xf32> to vector<8x32xf32>
    %197 = arith.mulf %194, %179 : vector<8x32xf32>
    %198 = arith.mulf %193, %195 : vector<8x32xf32>
    %199 = arith.addf %197, %198 : vector<8x32xf32>
    %200 = math.tanh %199 : vector<8x32xf32>
    %201 = arith.mulf %196, %200 : vector<8x32xf32>
    %c7_68 = arith.constant 7 : index
    %c0_69 = arith.constant 0 : index
    %c0_70 = arith.constant 0 : index
    %202 = vector.load %arg5[%c7_68, %c0_69, %c0_70] : memref<8x8x32xf32, #tpu.memory_space<vmem>>, vector<1x8x32xf32>
    %203 = vector.shape_cast %202 : vector<1x8x32xf32> to vector<8x32xf32>
    %204 = vector.shape_cast %201 : vector<8x32xf32> to vector<1x8x32xf32>
    tpu.vector_store %arg5[%c7_68, %c0_69, %c0_70], %204 {strides = array<i32>} : memref<8x8x32xf32, #tpu.memory_space<vmem>>, vector<1x8x32xf32>,
    return
  }
  func.func @transform_0(%arg0: i32) -> (i32, i32, i32) {
    %c0_i32 = arith.constant 0 : i32
    %c0_i32_0 = arith.constant 0 : i32
    %c0_i32_1 = arith.constant 0 : i32
    return %c0_i32, %arg0, %c0_i32_0 : i32, i32, i32
  }
  func.func @transform_1(%arg0: i32) -> (i32, i32) {
    %c0_i32 = arith.constant 0 : i32
    %c0_i32_0 = arith.constant 0 : i32
    %c0_i32_1 = arith.constant 0 : i32
    return %c0_i32, %c0_i32_0 : i32, i32
  }
  func.func @transform_2(%arg0: i32) -> (i32, i32) {
    %c0_i32 = arith.constant 0 : i32
    %c0_i32_0 = arith.constant 0 : i32
    %c0_i32_1 = arith.constant 0 : i32
    return %c0_i32, %c0_i32_0 : i32, i32
  }
  func.func @transform_3(%arg0: i32) -> (i32, i32) {
    %c0_i32 = arith.constant 0 : i32
    %c0_i32_0 = arith.constant 0 : i32
    %c0_i32_1 = arith.constant 0 : i32
    return %c0_i32, %c0_i32_0 : i32, i32
  }
  func.func @transform_4(%arg0: i32) -> (i32, i32, i32) {
    %c0_i32 = arith.constant 0 : i32
    %c0_i32_0 = arith.constant 0 : i32
    %c0_i32_1 = arith.constant 0 : i32
    return %c0_i32, %arg0, %c0_i32_0 : i32, i32, i32
  }
}

</mosaic_0001>

<bundles_post_ra>
// kernel: lstm_forward.1
= control target key start
LH: loop header
LB: loop body
LE: loop exit
PB: predicated region body
PF: predicated region fallthrough
CT: control target
= control target key end

     0   :  { %v1870_v0 = vmov 0.0|0.0   ;;  %vm1871_vm0 = vmmov 0   ;;  %v1872_v3 = vmov 0.0   ;;  %vm31_vm1 = vcmask 130048   ;;  %s1873_s9 = smov 64   ;;  %s1874_s10 = smov 32   ;;  %s2121_s1 = inlined_call_operand.vmem [shape: f32[16,128], index: 1, kind: input, shape index: {}]   ;;  %s2122_s0 = inlined_call_operand.vmem [shape: f32[8,8,16], index: 0, kind: input, shape index: {}]   ;;  %s2123_s2 = inlined_call_operand.vmem [shape: f32[32,128], index: 2, kind: input, shape index: {}]   ;;  %s2124_s3 = inlined_call_operand.vmem [shape: f32[1,128], index: 3, kind: input, shape index: {}]   ;;  %s2125_s4 = inlined_call_operand.vmem [shape: f32[8,8,32], index: 4, kind: output, shape index: {}]  }
   0x1   :  { %1705 = vmatprep.subr.bf16.mxu0 %v1870_v0  ;;  %v17_v1 = vld [vmem:[%s2121_s1] sm:$0xff]  ;;  %v18_v2 = vld [vmem:[%s2121_s1 + $0x8] sm:$0xff]  ;;  %1565 = vmatprep.mubr.msk.f32.mxu0 %vm1871_vm0, %v1872_v3  ;;  %v1463_v6 = vld [vmem:[%s2122_s0 + $0x10] sm:$0xff]  ;;  %vm630_vm2 = vcmask 261120  }
   0x2   :  { %v1909_v4 = vpack.c.bf16 %v18_v2, %v17_v1  ;;  %1708 = vmatprep.subr.bf16.mxu1 %v1870_v0  ;;  %1572 = vmatprep.mubr.msk.f32.mxu1 %vm1871_vm0, %v1872_v3  ;;  %v24_v5 = vld [vmem:[%s2122_s0] sm:$0xff]  ;;  %v20_v9 = vld [vmem:[%s2123_s2 + $0x8] sm:$0xff]  ;;  %v1471_v10 = vld [vmem:[%s2122_s0 + $0x30] sm:$0xff] }
   0x3   :  { %v1467_v7 = vld [vmem:[%s2122_s0 + $0x20] sm:$0xff]  ;;  %v21_v12 = vld [vmem:[%s2123_s2 + $0x10] sm:$0xff]  ;;  %v22_v13 = vld [vmem:[%s2123_s2 + $0x18] sm:$0xff] }
   0x4   :  { %1707 = vmatpush3.bf16.msra.mxu0 %v1909_v4  ;;  %1710 = vmatpush3.bf16.msra.mxu1 %v1909_v4  ;;  %v19_v8 = vld [vmem:[%s2123_s2] sm:$0xff]  ;;  %v1961_v14 = vpack.c.bf16 %v22_v13, %v21_v12  ;;  %v1461_v29 = vld [vmem:[%s2122_s0 + $0x8] sm:$0xff]  ;;  %v1465_v30 = vld [vmem:[%s2122_s0 + $0x18] sm:$0xff] }
   0x5   :  { %1711 = vmatprep.subr.bf16.mxu0 %v1870_v0  ;;  %1714 = vmatprep.subr.bf16.mxu1 %v1870_v0  ;;  %v1950_v11 = vpack.c.bf16 %v20_v9, %v19_v8  ;;  %v1978_v15 = vld [vmem:[%s2124_s3] ss:$0 sm:$0xff]  ;;  %v1469_v31 = vld [vmem:[%s2122_s0 + $0x28] sm:$0xff]  ;;  %v1473_v33 = vld [vmem:[%s2122_s0 + $0x38] sm:$0xff] }
   0x7   :  { %1566 = vmatmul.mubr.msk.f32.vlgmr.msra.gmra.mrb[0].mxu0 %vm31_vm1, %v24_v5  ;;  %1573 = vmatmul.mubr.msk.f32.vlgmr.msra.gmra.mrb[0].mxu1 %vm31_vm1, %v1461_v29 }
   0x8   :  { %1713 = vmatpush3.bf16.msra.mxu0 %v1909_v4  ;;  %1579 = vmatprep.mubr.msk.f32.mxu0 %vm1871_vm0, %v1872_v3 }
   0x9   :  { %1717 = vmatprep.subr.bf16.mxu0 %v1870_v0  ;;  %1716 = vmatpush3.bf16.msra.mxu1 %v1909_v4 }
   0xa   :  { %1586 = vmatprep.mubr.msk.f32.mxu1 %vm1871_vm0, %v1872_v3  ;;  %1720 = vmatprep.subr.bf16.mxu1 %v1870_v0 }
   0xb   :  { %1580 = vmatmul.mubr.msk.f32.vlgmr.msra.gmra.mrb[2].mxu0 %vm31_vm1, %v1463_v6 }
   0xc   :  { %1719 = vmatpush3.bf16.msra.mxu0 %v1909_v4  ;;  %1593 = vmatprep.mubr.msk.f32.mxu0 %vm1871_vm0, %v1872_v3 }
   0xd   :  { %1723 = vmatprep.subr.bf16.mxu0 %v1870_v0  ;;  %1587 = vmatmul.mubr.msk.f32.vlgmr.msra.gmra.mrb[2].mxu1 %vm31_vm1, %v1465_v30 }
   0xe   :  { %1722 = vmatpush3.bf16.msra.mxu1 %v1909_v4  ;;  %1600 = vmatprep.mubr.msk.f32.mxu1 %vm1871_vm0, %v1872_v3 }
   0xf   :  { %1594 = vmatmul.mubr.msk.f32.vlgmr.msra.gmra.mrb[4].mxu0 %vm31_vm1, %v1467_v7  ;;  %1726 = vmatprep.subr.bf16.mxu1 %v1870_v0 }
  0x10   :  { %1725 = vmatpush3.bf16.msra.mxu0 %v1909_v4  ;;  %1607 = vmatprep.mubr.msk.f32.mxu0 %vm1871_vm0, %v1872_v3 }
  0x11   :  { %1729 = vmatprep.subr.bf16.mxu0 %v1870_v0  ;;  %1601 = vmatmul.mubr.msk.f32.vlgmr.msra.gmra.mrb[4].mxu1 %vm31_vm1, %v1469_v31 }
  0x12   :  { %1728 = vmatpush3.bf16.msra.mxu1 %v1909_v4  ;;  %1614 = vmatprep.mubr.msk.f32.mxu1 %vm1871_vm0, %v1872_v3 }
  0x13   :  { %1608 = vmatmul.mubr.msk.f32.vlgmr.msra.gmra.mrb[6].mxu0 %vm31_vm1, %v1471_v10  ;;  %1735 = vmatprep.subr.bf16.mxu1 %v1870_v0 }
  0x14   :  { %1731 = vmatpush3.bf16.msra.mxu0 %v1950_v11  ;;  %1625 = vmatprep.mubr.msk.f32.mxu0 %vm1871_vm0, %v1872_v3 }
  0x15   :  { %1732 = vmatprep.subr.bf16.mxu0 %v1870_v0  ;;  %1615 = vmatmul.mubr.msk.f32.vlgmr.msra.gmra.mrb[6].mxu1 %vm31_vm1, %v1473_v33 }
  0x16   :  { %1737 = vmatpush3.bf16.msra.mxu1 %v1950_v11  ;;  %1636 = vmatprep.mubr.msk.f32.mxu1 %vm1871_vm0, %v1872_v3 }
  0x17   :  { %1738 = vmatprep.subr.bf16.mxu1 %v1870_v0 }
  0x18   :  { %1734 = vmatpush3.bf16.msra.mxu0 %v1961_v14 }
  0x19   :  { %1741 = vmatprep.subr.bf16.mxu0 %v1870_v0 }
  0x1a   :  { %1740 = vmatpush3.bf16.msra.mxu1 %v1961_v14 }
  0x1b   :  { %1626 = vmatmul.mubr.f32.vlgmr.msra.gmra.mrb[0].mxu0 %v1872_v3  ;;  %1747 = vmatprep.subr.bf16.mxu1 %v1870_v0 }
  0x1c   :  { %1743 = vmatpush3.bf16.msra.mxu0 %v1950_v11  ;;  %1647 = vmatprep.mubr.msk.f32.mxu0 %vm1871_vm0, %v1872_v3 }
  0x1d   :  { %1744 = vmatprep.subr.bf16.mxu0 %v1870_v0 }
  0x20   :  { %1746 = vmatpush3.bf16.msra.mxu0 %v1961_v14 }
  0x21   :  { %1753 = vmatprep.subr.bf16.mxu0 %v1870_v0 }
  0xee   :  { %v700_v16 = vpop.f32.mrb[0].mxu0 }
  0xef   :  { %v1777_v17 = vadd.f32 %v1978_v15, %v700_v16  ;;  %v1627_v18 = vpop.f32.mrb[1].mxu0 }
  0xf1   :  { %1806 = vtanh.f32 %v1777_v17  ;;  %v1475_v20 = vmul.f32 -1.442695, %v1777_v17 }
  0xf3   :  { %1808 = vpow2.f32 %v1475_v20 }
  0xfb   :  { %v1807_v19 = vpop.eup %1806 }
  0xfc   :  { %714 = vrot.lane.b32.xlu0 %v1807_v19, %s1873_s9 }
  0xfd   :  { %v1809_v21 = vpop.eup %1808 }
  0xfe   :  { %v708_v22 = vadd.f32 1.0, %v1809_v21 }
 0x100   :  { %1810 = vrcp.f32 %v708_v22 }
 0x10a   :  { %v1811_v23 = vpop.eup %1810 }
 0x10b   :  { %v712_v26 = vmul.f32 0.0, %v1811_v23 }
 0x16e   :  { %v715_v24 = vpop.permute.xlu0 %714 }
 0x16f   :  { %v717_v25 = vmul.f32 %v1811_v23, %v715_v24 }
 0x171   :  { %719 = vrot.lane.b32.xlu0 %v717_v25, %s1874_s10 }
 0x1e3   :  { %v720_v27 = vpop.permute.xlu0 %719 }
 0x1e4   :  { %v722_v28 = vadd.f32 %v720_v27, %v712_v26 }
 0x1e6   :  { %1812 = vtanh.f32 %v722_v28 }
 0x1f0   :  { %v1813_v32 = vpop.eup %1812 }
 0x1f1   :  { %725 = vrot.lane.b32.xlu1 %v1813_v32, %s1873_s9 }
 0x263   :  { %v726_v34 = vpop.permute.xlu1 %725 }
 0x264   :  { %v728_v35 = vmul.f32 %v1811_v23, %v726_v34 }
 0x266   :  { %730 = vrot.lane.b32.xlu1 %v728_v35, %s1874_s10 }
 0x2d8   :  { %v731_v36 = vpop.permute.xlu1 %730 }
 0x2d9   :  { %733 = vst.msk [vmem:[%s2125_s4] sm:$0xff] %vm630_vm2, %v731_v36  ;;  %1637 = vmatmul.mubr.msk.f32.vlgmr.msra.gmra.mrb[0].mxu1 %vm630_vm2, %v731_v36 }
 0x2da   :  { %1749 = vmatpush3.bf16.msra.mxu1 %v1950_v11  ;;  %1658 = vmatprep.mubr.msk.f32.mxu1 %vm1871_vm0, %v1872_v3 }
 0x2db   :  { %1750 = vmatprep.subr.bf16.mxu1 %v1870_v0 }
 0x2de   :  { %1752 = vmatpush3.bf16.msra.mxu1 %v1961_v14 }
 0x2df   :  { %1759 = vmatprep.subr.bf16.mxu1 %v1870_v0 }
 0x3ac   :  { %v802_v37 = vpop.f32.mrb[0].mxu1 }
 0x3ad   :  { %v1778_v38 = vadd.f32 %v1978_v15, %v802_v37  ;;  %v1638_v39 = vpop.f32.mrb[1].mxu1 }
 0x3af   :  { %1814 = vtanh.f32 %v1778_v38  ;;  %v1477_v41 = vmul.f32 -1.442695, %v1778_v38 }
 0x3b1   :  { %1816 = vpow2.f32 %v1477_v41 }
 0x3b9   :  { %v1815_v40 = vpop.eup %1814 }
 0x3ba   :  { %816 = vrot.lane.b32.xlu0 %v1815_v40, %s1873_s9 }
 0x3bb   :  { %v1817_v42 = vpop.eup %1816 }
 0x3bc   :  { %v810_v43 = vadd.f32 1.0, %v1817_v42 }
 0x3be   :  { %1818 = vrcp.f32 %v810_v43 }
 0x3c8   :  { %v1819_v44 = vpop.eup %1818 }
 0x3c9   :  { %v814_v47 = vmul.f32 %v1819_v44, %v722_v28 }
 0x42c   :  { %v817_v45 = vpop.permute.xlu0 %816 }
 0x42d   :  { %v819_v46 = vmul.f32 %v1819_v44, %v817_v45 }
 0x42f   :  { %821 = vrot.lane.b32.xlu1 %v819_v46, %s1874_s10 }
 0x4a1   :  { %v822_v48 = vpop.permute.xlu1 %821 }
 0x4a2   :  { %v824_v49 = vadd.f32 %v822_v48, %v814_v47 }
 0x4a4   :  { %1820 = vtanh.f32 %v824_v49 }
 0x4ae   :  { %v1821_v50 = vpop.eup %1820 }
 0x4af   :  { %827 = vrot.lane.b32.xlu0 %v1821_v50, %s1873_s9 }
 0x521   :  { %v828_v51 = vpop.permute.xlu0 %827 }
 0x522   :  { %v830_v52 = vmul.f32 %v1819_v44, %v828_v51 }
 0x524   :  { %832 = vrot.lane.b32.xlu1 %v830_v52, %s1874_s10 }
 0x596   :  { %v833_v53 = vpop.permute.xlu1 %832 }
 0x597   :  { %1478 = vst.msk [vmem:[%s2125_s4 + $0x8] sm:$0xff] %vm630_vm2, %v833_v53  ;;  %1648 = vmatmul.mubr.msk.f32.vlgmr.msra.gmra.mrb[2].mxu0 %vm630_vm2, %v833_v53 }
 0x598   :  { %1755 = vmatpush3.bf16.msra.mxu0 %v1950_v11  ;;  %1669 = vmatprep.mubr.msk.f32.mxu0 %vm1871_vm0, %v1872_v3 }
 0x599   :  { %1756 = vmatprep.subr.bf16.mxu0 %v1870_v0 }
 0x59c   :  { %1758 = vmatpush3.bf16.msra.mxu0 %v1961_v14 }
 0x59d   :  { %1765 = vmatprep.subr.bf16.mxu0 %v1870_v0 }
 0x66a   :  { %v905_v54 = vpop.f32.mrb[2].mxu0 }
 0x66b   :  { %v1779_v55 = vadd.f32 %v1978_v15, %v905_v54  ;;  %v1649_v56 = vpop.f32.mrb[3].mxu0 }
 0x66d   :  { %1822 = vtanh.f32 %v1779_v55  ;;  %v1480_v58 = vmul.f32 -1.442695, %v1779_v55 }
 0x66f   :  { %1824 = vpow2.f32 %v1480_v58 }
 0x677   :  { %v1823_v57 = vpop.eup %1822 }
 0x678   :  { %919 = vrot.lane.b32.xlu0 %v1823_v57, %s1873_s9 }
 0x679   :  { %v1825_v59 = vpop.eup %1824 }
 0x67a   :  { %v913_v60 = vadd.f32 1.0, %v1825_v59 }
 0x67c   :  { %1826 = vrcp.f32 %v913_v60 }
 0x686   :  { %v1827_v61 = vpop.eup %1826 }
 0x687   :  { %v917_v1 = vmul.f32 %v1827_v61, %v824_v49 }
 0x6ea   :  { %v920_v62 = vpop.permute.xlu0 %919 }
 0x6eb   :  { %v922_v63 = vmul.f32 %v1827_v61, %v920_v62 }
 0x6ed   :  { %924 = vrot.lane.b32.xlu1 %v922_v63, %s1874_s10 }
 0x75f   :  { %v925_v2 = vpop.permute.xlu1 %924 }
 0x760   :  { %v927_v4 = vadd.f32 %v925_v2, %v917_v1 }
 0x762   :  { %1828 = vtanh.f32 %v927_v4 }
 0x76c   :  { %v1829_v5 = vpop.eup %1828 }
 0x76d   :  { %930 = vrot.lane.b32.xlu0 %v1829_v5, %s1873_s9 }
 0x7df   :  { %v931_v6 = vpop.permute.xlu0 %930 }
 0x7e0   :  { %v933_v7 = vmul.f32 %v1827_v61, %v931_v6 }
 0x7e2   :  { %935 = vrot.lane.b32.xlu1 %v933_v7, %s1874_s10 }
 0x854   :  { %v936_v8 = vpop.permute.xlu1 %935 }
 0x855   :  { %1481 = vst.msk [vmem:[%s2125_s4 + $0x10] sm:$0xff] %vm630_vm2, %v936_v8  ;;  %1659 = vmatmul.mubr.msk.f32.vlgmr.msra.gmra.mrb[2].mxu1 %vm630_vm2, %v936_v8 }
 0x856   :  { %1761 = vmatpush3.bf16.msra.mxu1 %v1950_v11  ;;  %1680 = vmatprep.mubr.msk.f32.mxu1 %vm1871_vm0, %v1872_v3 }
 0x857   :  { %1762 = vmatprep.subr.bf16.mxu1 %v1870_v0 }
 0x85a   :  { %1764 = vmatpush3.bf16.msra.mxu1 %v1961_v14 }
 0x85b   :  { %1771 = vmatprep.subr.bf16.mxu1 %v1870_v0 }
 0x928   :  { %v1008_v9 = vpop.f32.mrb[2].mxu1 }
 0x929   :  { %v1780_v10 = vadd.f32 %v1978_v15, %v1008_v9  ;;  %v1660_v12 = vpop.f32.mrb[3].mxu1 }
 0x92b   :  { %1830 = vtanh.f32 %v1780_v10  ;;  %v1483_v16 = vmul.f32 -1.442695, %v1780_v10 }
 0x92d   :  { %1832 = vpow2.f32 %v1483_v16 }
 0x935   :  { %v1831_v13 = vpop.eup %1830 }
 0x936   :  { %1022 = vrot.lane.b32.xlu0 %v1831_v13, %s1873_s9 }
 0x937   :  { %v1833_v17 = vpop.eup %1832 }
 0x938   :  { %v1016_v18 = vadd.f32 1.0, %v1833_v17 }
 0x93a   :  { %1834 = vrcp.f32 %v1016_v18 }
 0x944   :  { %v1835_v19 = vpop.eup %1834 }
 0x945   :  { %v1020_v22 = vmul.f32 %v1835_v19, %v927_v4 }
 0x9a8   :  { %v1023_v20 = vpop.permute.xlu0 %1022 }
 0x9a9   :  { %v1025_v21 = vmul.f32 %v1835_v19, %v1023_v20 }
 0x9ab   :  { %1027 = vrot.lane.b32.xlu1 %v1025_v21, %s1874_s10 }
 0xa1d   :  { %v1028_v23 = vpop.permute.xlu1 %1027 }
 0xa1e   :  { %v1030_v24 = vadd.f32 %v1028_v23, %v1020_v22 }
 0xa20   :  { %1836 = vtanh.f32 %v1030_v24 }
 0xa2a   :  { %v1837_v25 = vpop.eup %1836 }
 0xa2b   :  { %1033 = vrot.lane.b32.xlu0 %v1837_v25, %s1873_s9 }
 0xa9d   :  { %v1034_v26 = vpop.permute.xlu0 %1033 }
 0xa9e   :  { %v1036_v27 = vmul.f32 %v1835_v19, %v1034_v26 }
 0xaa0   :  { %1038 = vrot.lane.b32.xlu1 %v1036_v27, %s1874_s10 }
 0xb12   :  { %v1039_v28 = vpop.permute.xlu1 %1038 }
 0xb13   :  { %1484 = vst.msk [vmem:[%s2125_s4 + $0x18] sm:$0xff] %vm630_vm2, %v1039_v28  ;;  %1670 = vmatmul.mubr.msk.f32.vlgmr.msra.gmra.mrb[4].mxu0 %vm630_vm2, %v1039_v28 }
 0xb14   :  { %1767 = vmatpush3.bf16.msra.mxu0 %v1950_v11  ;;  %1691 = vmatprep.mubr.msk.f32.mxu0 %vm1871_vm0, %v1872_v3 }
 0xb15   :  { %1768 = vmatprep.subr.bf16.mxu0 %v1870_v0 }
 0xb18   :  { %1770 = vmatpush3.bf16.msra.mxu0 %v1961_v14 }
 0xbe6   :  { %v1111_v29 = vpop.f32.mrb[4].mxu0 }
 0xbe7   :  { %v1781_v30 = vadd.f32 %v1978_v15, %v1111_v29  ;;  %v1671_v31 = vpop.f32.mrb[5].mxu0 }
 0xbe9   :  { %1838 = vtanh.f32 %v1781_v30  ;;  %v1486_v33 = vmul.f32 -1.442695, %v1781_v30 }
 0xbeb   :  { %1840 = vpow2.f32 %v1486_v33 }
 0xbf3   :  { %v1839_v32 = vpop.eup %1838 }
 0xbf4   :  { %1125 = vrot.lane.b32.xlu0 %v1839_v32, %s1873_s9 }
 0xbf5   :  { %v1841_v34 = vpop.eup %1840 }
 0xbf6   :  { %v1119_v35 = vadd.f32 1.0, %v1841_v34 }
 0xbf8   :  { %1842 = vrcp.f32 %v1119_v35 }
 0xc02   :  { %v1843_v36 = vpop.eup %1842 }
 0xc03   :  { %v1123_v39 = vmul.f32 %v1843_v36, %v1030_v24 }
 0xc66   :  { %v1126_v37 = vpop.permute.xlu0 %1125 }
 0xc67   :  { %v1128_v38 = vmul.f32 %v1843_v36, %v1126_v37 }
 0xc69   :  { %1130 = vrot.lane.b32.xlu1 %v1128_v38, %s1874_s10 }
 0xcdb   :  { %v1131_v40 = vpop.permute.xlu1 %1130 }
 0xcdc   :  { %v1133_v41 = vadd.f32 %v1131_v40, %v1123_v39 }
 0xcde   :  { %1844 = vtanh.f32 %v1133_v41 }
 0xce8   :  { %v1845_v42 = vpop.eup %1844 }
 0xce9   :  { %1136 = vrot.lane.b32.xlu0 %v1845_v42, %s1873_s9 }
 0xd5b   :  { %v1137_v43 = vpop.permute.xlu0 %1136 }
 0xd5c   :  { %v1139_v44 = vmul.f32 %v1843_v36, %v1137_v43 }
 0xd5e   :  { %1141 = vrot.lane.b32.xlu1 %v1139_v44, %s1874_s10 }
 0xdd0   :  { %v1142_v45 = vpop.permute.xlu1 %1141 }
 0xdd1   :  { %1487 = vst.msk [vmem:[%s2125_s4 + $0x20] sm:$0xff] %vm630_vm2, %v1142_v45  ;;  %1681 = vmatmul.mubr.msk.f32.vlgmr.msra.gmra.mrb[4].mxu1 %vm630_vm2, %v1142_v45 }
 0xdd2   :  { %1773 = vmatpush3.bf16.msra.mxu1 %v1950_v11  ;;  %1702 = vmatprep.mubr.msk.f32.mxu1 %vm1871_vm0, %v1872_v3 }
 0xdd3   :  { %1774 = vmatprep.subr.bf16.mxu1 %v1870_v0 }
 0xdd6   :  { %1776 = vmatpush3.bf16.msra.mxu1 %v1961_v14 }
 0xea4   :  { %v1214_v46 = vpop.f32.mrb[4].mxu1 }
 0xea5   :  { %v1782_v47 = vadd.f32 %v1978_v15, %v1214_v46  ;;  %v1682_v48 = vpop.f32.mrb[5].mxu1 }
 0xea7   :  { %1846 = vtanh.f32 %v1782_v47  ;;  %v1489_v50 = vmul.f32 -1.442695, %v1782_v47 }
 0xea9   :  { %1848 = vpow2.f32 %v1489_v50 }
 0xeb1   :  { %v1847_v49 = vpop.eup %1846 }
 0xeb2   :  { %1228 = vrot.lane.b32.xlu0 %v1847_v49, %s1873_s9 }
 0xeb3   :  { %v1849_v51 = vpop.eup %1848 }
 0xeb4   :  { %v1222_v52 = vadd.f32 1.0, %v1849_v51 }
 0xeb6   :  { %1850 = vrcp.f32 %v1222_v52 }
 0xec0   :  { %v1851_v11 = vpop.eup %1850 }
 0xec1   :  { %v1226_v0 = vmul.f32 %v1851_v11, %v1133_v41 }
 0xf24   :  { %v1229_v53 = vpop.permute.xlu0 %1228 }
 0xf25   :  { %v1231_v3 = vmul.f32 %v1851_v11, %v1229_v53 }
 0xf27   :  { %1233 = vrot.lane.b32.xlu1 %v1231_v3, %s1874_s10 }
 0xf99   :  { %v1234_v14 = vpop.permute.xlu1 %1233 }
 0xf9a   :  { %v1236_v54 = vadd.f32 %v1234_v14, %v1226_v0 }
 0xf9c   :  { %1852 = vtanh.f32 %v1236_v54 }
 0xfa6   :  { %v1853_v55 = vpop.eup %1852 }
 0xfa7   :  { %1239 = vrot.lane.b32.xlu0 %v1853_v55, %s1873_s9 }
0x1019   :  { %v1240_v56 = vpop.permute.xlu0 %1239 }
0x101a   :  { %v1242_v57 = vmul.f32 %v1851_v11, %v1240_v56 }
0x101c   :  { %1244 = vrot.lane.b32.xlu1 %v1242_v57, %s1874_s10 }
0x108e   :  { %v1245_v58 = vpop.permute.xlu1 %1244 }
0x108f   :  { %1490 = vst.msk [vmem:[%s2125_s4 + $0x28] sm:$0xff] %vm630_vm2, %v1245_v58  ;;  %1692 = vmatmul.mubr.msk.f32.vlgmr.msra.gmra.mrb[6].mxu0 %vm630_vm2, %v1245_v58 }
0x1162   :  { %v1317_v59 = vpop.f32.mrb[6].mxu0 }
0x1163   :  { %v1783_v60 = vadd.f32 %v1978_v15, %v1317_v59  ;;  %v1693_v61 = vpop.f32.mrb[7].mxu0 }
0x1165   :  { %1854 = vtanh.f32 %v1783_v60  ;;  %v1492_v63 = vmul.f32 -1.442695, %v1783_v60 }
0x1167   :  { %1856 = vpow2.f32 %v1492_v63 }
0x116f   :  { %v1855_v62 = vpop.eup %1854 }
0x1170   :  { %1331 = vrot.lane.b32.xlu0 %v1855_v62, %s1873_s9 }
0x1171   :  { %v1857_v1 = vpop.eup %1856 }
0x1172   :  { %v1325_v2 = vadd.f32 1.0, %v1857_v1 }
0x1174   :  { %1858 = vrcp.f32 %v1325_v2 }
0x117e   :  { %v1859_v4 = vpop.eup %1858 }
0x117f   :  { %v1329_v7 = vmul.f32 %v1859_v4, %v1236_v54 }
0x11e2   :  { %v1332_v5 = vpop.permute.xlu0 %1331 }
0x11e3   :  { %v1334_v6 = vmul.f32 %v1859_v4, %v1332_v5 }
0x11e5   :  { %1336 = vrot.lane.b32.xlu1 %v1334_v6, %s1874_s10 }
0x1257   :  { %v1337_v8 = vpop.permute.xlu1 %1336 }
0x1258   :  { %v1339_v9 = vadd.f32 %v1337_v8, %v1329_v7 }
0x125a   :  { %1860 = vtanh.f32 %v1339_v9 }
0x1264   :  { %v1861_v10 = vpop.eup %1860 }
0x1265   :  { %1342 = vrot.lane.b32.xlu0 %v1861_v10, %s1873_s9 }
0x12d7   :  { %v1343_v12 = vpop.permute.xlu0 %1342 }
0x12d8   :  { %v1345_v13 = vmul.f32 %v1859_v4, %v1343_v12 }
0x12da   :  { %1347 = vrot.lane.b32.xlu1 %v1345_v13, %s1874_s10 }
0x134c   :  { %v1348_v16 = vpop.permute.xlu1 %1347 }
0x134d   :  { %1493 = vst.msk [vmem:[%s2125_s4 + $0x30] sm:$0xff] %vm630_vm2, %v1348_v16  ;;  %1703 = vmatmul.mubr.msk.f32.vlgmr.msra.gmra.mrb[6].mxu1 %vm630_vm2, %v1348_v16 }
0x1420   :  { %v1420_v17 = vpop.f32.mrb[6].mxu1 }
0x1421   :  { %v1784_v18 = vadd.f32 %v1978_v15, %v1420_v17  ;;  %v1704_v19 = vpop.f32.mrb[7].mxu1 }
0x1423   :  { %1862 = vtanh.f32 %v1784_v18  ;;  %v1495_v21 = vmul.f32 -1.442695, %v1784_v18 }
0x1425   :  { %1864 = vpow2.f32 %v1495_v21 }
0x142d   :  { %v1863_v20 = vpop.eup %1862 }
0x142e   :  { %1434 = vrot.lane.b32.xlu0 %v1863_v20, %s1873_s9 }
0x142f   :  { %v1865_v22 = vpop.eup %1864 }
0x1430   :  { %v1428_v23 = vadd.f32 1.0, %v1865_v22 }
0x1432   :  { %1866 = vrcp.f32 %v1428_v23 }
0x143c   :  { %v1867_v24 = vpop.eup %1866 }
0x143d   :  { %v1432_v27 = vmul.f32 %v1867_v24, %v1339_v9 }
0x14a0   :  { %v1435_v25 = vpop.permute.xlu0 %1434 }
0x14a1   :  { %v1437_v26 = vmul.f32 %v1867_v24, %v1435_v25 }
0x14a3   :  { %1439 = vrot.lane.b32.xlu1 %v1437_v26, %s1874_s10 }
0x1515   :  { %v1440_v28 = vpop.permute.xlu1 %1439 }
0x1516   :  { %v1442_v29 = vadd.f32 %v1440_v28, %v1432_v27 }
0x1518   :  { %1868 = vtanh.f32 %v1442_v29 }
0x1522   :  { %v1869_v15 = vpop.eup %1868 }
0x1523   :  { %1445 = vrot.lane.b32.xlu0 %v1869_v15, %s1873_s9 }
0x1595   :  { %v1446_v30 = vpop.permute.xlu0 %1445 }
0x1596   :  { %v1448_v31 = vmul.f32 %v1867_v24, %v1446_v30 }
0x1598   :  { %1450 = vrot.lane.b32.xlu1 %v1448_v31, %s1874_s10 }
0x160a   :  { %v1451_v32 = vpop.permute.xlu1 %1450 }
0x160b   :  { %1496 = vst.msk [vmem:[%s2125_s4 + $0x38] sm:$0xff] %vm630_vm2, %v1451_v32 }

</bundles_post_ra>
